<compile_context>
chip_gen: v7x
topology: tpu7x:2x2x1
jax: 0.10.0
libtpu: 0.0.40
codegen_flags: <defaults>
</compile_context>

<pallas_src>
import functools

import jax
import jax.numpy as jnp
from jax import lax
from jax.experimental import pallas as pl
from jax.experimental.pallas import tpu as pltpu


def _fused_conv_block_kernel(x_ref, w1_ref, w2_ref, p_ref, mask_ref, o_ref,
                             y1e_ref,
                             *, K, pad, Wp, HpWp, L, M, c_out,
                             eps, slope, inv_hw):
    """Fused conv->IN->LReLU->conv->IN->LReLU for one batch element.

    x_ref:    (1, Cin, L)      extended flat padded input (zeros in margins)
    w1_ref:   (Cout, K*K*Cin)  conv1 weights, rows ordered (dy, dx, ci)
    w2_ref:   (Cout, K*K*Cout) conv2 weights, same ordering
    p_ref:    (Cout, 6)        columns = [b1, g1, be1, b2, g2, be2]
    mask_ref: (1, HpWp)        1.0 on valid (interior) pixels, 0.0 on ring
    o_ref:    (1, Cout, HpWp)  output in padded-flat coords (wrapper slices)
    y1e_ref:  (Cout, L)        VMEM scratch: extended stage-2 input
    """
    mask = mask_ref[...]                                    # (1, HpWp)

    def conv_in_lrelu(xe, w_ref, p_off):
        # xe: (C, L) extended flat buffer, zero outside the padded image.
        # Shifted lane-slices of xe == im2col rows, without any reshape.
        taps = []
        for dy in range(K):
            for dx in range(K):
                s = M + (dy - pad) * Wp + (dx - pad)
                taps.append(xe[:, s:s + HpWp])
        cols = jnp.concatenate(taps, axis=0)                # (K*K*C, HpWp)

        # Single MXU matmul per stage.
        acc = jnp.dot(w_ref[...], cols,
                      preferred_element_type=jnp.float32)   # (Cout, HpWp)
        acc = acc + p_ref[:, p_off:p_off + 1]               # conv bias

        # InstanceNorm2d over valid pixels only: per-channel mean / biased
        # variance over H*W, eps=1e-5, affine — matches PyTorch defaults.
        mean = jnp.sum(acc * mask, axis=1, keepdims=True) * inv_hw
        cent = acc - mean
        cm = cent * mask
        var = jnp.sum(cm * cm, axis=1, keepdims=True) * inv_hw
        y = cent * lax.rsqrt(var + eps)
        y = y * p_ref[:, p_off + 1:p_off + 2] + p_ref[:, p_off + 2:p_off + 3]

        # LeakyReLU(slope).  Ring pixels hold garbage but stay finite; they
        # are masked away before stage 2 and sliced away by the wrapper.
        return jnp.where(y >= 0, y, slope * y)              # (Cout, HpWp)

    # Stage 1: input margins / conv padding are already zero (wrapper pad).
    y1 = conv_in_lrelu(x_ref[0], w1_ref, 0)

    # Stage 2 input: zero margins + ring, activation stays in VMEM.
    y1e_ref[...] = jnp.zeros_like(y1e_ref)
    y1e_ref[:, M:M + HpWp] = y1 * mask
    y2 = conv_in_lrelu(y1e_ref[...], w2_ref, 3)

    o_ref[0] = y2.astype(o_ref.dtype)


def _conv_block_impl(x, w1m, w2m, packed, K, pad):
    N, c_in, H, W = x.shape
    c_out = w1m.shape[0]
    Hp, Wp = H + 2 * pad, W + 2 * pad
    HpWp = Hp * Wp
    # Lane-aligned margin, >= pad*(Wp+1) so every tap shift stays in bounds.
    M = ((pad * (Wp + 1) + 127) // 128) * 128
    L = HpWp + 2 * M

    # Cheap one-time XLA prep: zero-pad the ring, flatten spatial onto one
    # axis, add the lane-aligned margins.
    xp = jnp.pad(x, ((0, 0), (0, 0), (pad, pad), (pad, pad)))
    xe = jnp.pad(xp.reshape(N, c_in, HpWp), ((0, 0), (0, 0), (M, M)))

    mask = jnp.zeros((Hp, Wp), jnp.float32)
    mask = mask.at[pad:pad + H, pad:pad + W].set(1.0).reshape(1, HpWp)

    kernel = functools.partial(_fused_conv_block_kernel,
                               K=K, pad=pad, Wp=Wp, HpWp=HpWp, L=L, M=M,
                               c_out=c_out, eps=1e-5, slope=0.2,
                               inv_hw=1.0 / (H * W))

    out = pl.pallas_call(
        kernel,
        out_shape=jax.ShapeDtypeStruct((N, c_out, HpWp), jnp.float32),
        grid=(N,),
        in_specs=[
            pl.BlockSpec((1, c_in, L), lambda n: (n, 0, 0)),
            pl.BlockSpec((c_out, K * K * c_in), lambda n: (0, 0)),
            pl.BlockSpec((c_out, K * K * c_out), lambda n: (0, 0)),
            pl.BlockSpec((c_out, 6), lambda n: (0, 0)),
            pl.BlockSpec((1, HpWp), lambda n: (0, 0)),
        ],
        out_specs=pl.BlockSpec((1, c_out, HpWp), lambda n: (n, 0, 0)),
        scratch_shapes=[pltpu.VMEM((c_out, L), jnp.float32)],
        compiler_params=pltpu.CompilerParams(
            dimension_semantics=("parallel",)),
    )(xe, w1m, w2m, packed, mask)

    # Drop the padded ring (tiny XLA slice).
    return out.reshape(N, c_out, Hp, Wp)[:, :, pad:pad + H, pad:pad + W]


@jax.jit
def conv_block(x_nchw, params):
    """NCHW in -> NCHW out, matching the PyTorch module's forward()."""
    x = x_nchw.astype(jnp.float32)
    w1, w2 = params["w1"], params["w2"]
    c_out, c_in, K, _ = w1.shape
    pad = (K - 1) // 2
    # (Cout, Cin, KH, KW) -> (Cout, KH*KW*Cin); contraction order (dy, dx, ci)
    # matches the tap-concatenation order built inside the kernel.
    w1m = jnp.transpose(w1, (0, 2, 3, 1)).reshape(c_out, K * K * c_in)
    w2m = jnp.transpose(w2, (0, 2, 3, 1)).reshape(c_out, K * K * c_out)
    packed = jnp.stack([params["b1"], params["g1"], params["be1"],
                        params["b2"], params["g2"], params["be2"]],
                       axis=1).astype(jnp.float32)
    return _conv_block_impl(x, w1m, w2m, packed, K, pad)


def init_params(key, dim_in, dim_out, k=3):
    """Deterministic init matching PyTorch parameter shapes / default init."""
    keys = jax.random.split(key, 8)

    def conv_init(kw, kb, cin, cout):
        fan_in = cin * k * k
        bound = 1.0 / (fan_in ** 0.5)
        w = jax.random.uniform(kw, (cout, cin, k, k), jnp.float32, -bound, bound)
        b = jax.random.uniform(kb, (cout,), jnp.float32, -bound, bound)
        return w, b

    w1, b1 = conv_init(keys[0], keys[1], dim_in, dim_out)
    w2, b2 = conv_init(keys[2], keys[3], dim_out, dim_out)
    # InstanceNorm2d(affine=True) default: weight=1, bias=0; perturb slightly
    # so the affine path is exercised by the self-check.
    g1 = 1.0 + 0.1 * jax.random.normal(keys[4], (dim_out,), jnp.float32)
    be1 = 0.1 * jax.random.normal(keys[5], (dim_out,), jnp.float32)
    g2 = 1.0 + 0.1 * jax.random.normal(keys[6], (dim_out,), jnp.float32)
    be2 = 0.1 * jax.random.normal(keys[7], (dim_out,), jnp.float32)
    return dict(w1=w1, b1=b1, g1=g1, be1=be1,
                w2=w2, b2=b2, g2=g2, be2=be2)


def _reference(x, params):
    """Pure-JAX reference (same math as the PyTorch module)."""
    def stage(x, w, b, g, be):
        y = lax.conv_general_dilated(
            x, w, window_strides=(1, 1), padding=((1, 1), (1, 1)),
            dimension_numbers=("NCHW", "OIHW", "NCHW"))
        y = y + b[None, :, None, None]
        mean = jnp.mean(y, axis=(2, 3), keepdims=True)
        var = jnp.mean((y - mean) ** 2, axis=(2, 3), keepdims=True)
        y = (y - mean) * lax.rsqrt(var + 1e-5)
        y = y * g[None, :, None, None] + be[None, :, None, None]
        return jnp.where(y >= 0, y, 0.2 * y)

    y = stage(x, params["w1"], params["b1"], params["g1"], params["be1"])
    return stage(y, params["w2"], params["b2"], params["g2"], params["be2"])


if __name__ == "__main__":
    key = jax.random.PRNGKey(0)
    k_x, k_p = jax.random.split(key)

    N, C_IN, C_OUT, H, W = 2, 4, 8, 16, 16
    x = jax.random.normal(k_x, (N, C_IN, H, W), jnp.float32)
    params = init_params(k_p, C_IN, C_OUT)

    out = conv_block(x, params)
    out = jax.block_until_ready(out)

    assert out.shape == (N, C_OUT, H, W), out.shape
    assert jnp.isfinite(out).all()

    ref = _reference(x, params)
    err = float(jnp.max(jnp.abs(out - ref)))
    assert err < 1e-3, f"mismatch vs reference: max abs err = {err}"

    print("KERNEL_OK")
</pallas_src>

<mosaic_0001>
module attributes {stable_mosaic.version = 11 : i64} {
  func.func @_fused_conv_block_kernel(%arg0: i32, %arg1: memref<1x4x580xf32, #tpu.memory_space<vmem>>, %arg2: memref<8x36xf32, #tpu.memory_space<vmem>>, %arg3: memref<8x72xf32, #tpu.memory_space<vmem>>, %arg4: memref<8x6xf32, #tpu.memory_space<vmem>>, %arg5: memref<1x324xf32, #tpu.memory_space<vmem>>, %arg6: memref<1x8x324xf32, #tpu.memory_space<vmem>>, %arg7: memref<8x580xf32, #tpu.memory_space<vmem>>) attributes {dimension_semantics = [#tpu.dimension_semantics<parallel>], iteration_bounds = array<i64: 2>, scalar_prefetch = 0 : i64, scratch_operands = 1 : i64, tpu.core_type = #tpu.core_type<tc>, window_params = [{transform_indices = @transform_0, window_bounds = array<i64: 1, 4, 580>}, {pipeline_mode = #tpu.pipeline_mode<synchronous>, transform_indices = @transform_1, window_bounds = array<i64: 8, 36>}, {pipeline_mode = #tpu.pipeline_mode<synchronous>, transform_indices = @transform_2, window_bounds = array<i64: 8, 72>}, {pipeline_mode = #tpu.pipeline_mode<synchronous>, transform_indices = @transform_3, window_bounds = array<i64: 8, 6>}, {pipeline_mode = #tpu.pipeline_mode<synchronous>, transform_indices = @transform_4, window_bounds = array<i64: 1, 324>}, {transform_indices = @transform_5, window_bounds = array<i64: 1, 8, 324>}]} {
    %c0 = arith.constant 0 : index
    %c0_0 = arith.constant 0 : index
    %0 = vector.load %arg5[%c0, %c0_0] : memref<1x324xf32, #tpu.memory_space<vmem>>, vector<1x324xf32>
    %c0_1 = arith.constant 0 : index
    %c0_2 = arith.constant 0 : index
    %c0_3 = arith.constant 0 : index
    %1 = vector.load %arg1[%c0_1, %c0_2, %c0_3] : memref<1x4x580xf32, #tpu.memory_space<vmem>>, vector<1x4x580xf32>
    %2 = vector.shape_cast %1 : vector<1x4x580xf32> to vector<4x580xf32>
    %3 = vector.extract_strided_slice %2 {offsets = [0, 109], sizes = [4, 324], strides = [1, 1]} : vector<4x580xf32> to vector<4x324xf32>
    %4 = vector.extract_strided_slice %2 {offsets = [0, 110], sizes = [4, 324], strides = [1, 1]} : vector<4x580xf32> to vector<4x324xf32>
    %5 = vector.extract_strided_slice %2 {offsets = [0, 111], sizes = [4, 324], strides = [1, 1]} : vector<4x580xf32> to vector<4x324xf32>
    %6 = vector.extract_strided_slice %2 {offsets = [0, 127], sizes = [4, 324], strides = [1, 1]} : vector<4x580xf32> to vector<4x324xf32>
    %7 = vector.extract_strided_slice %2 {offsets = [0, 128], sizes = [4, 324], strides = [1, 1]} : vector<4x580xf32> to vector<4x324xf32>
    %8 = vector.extract_strided_slice %2 {offsets = [0, 129], sizes = [4, 324], strides = [1, 1]} : vector<4x580xf32> to vector<4x324xf32>
    %9 = vector.extract_strided_slice %2 {offsets = [0, 145], sizes = [4, 324], strides = [1, 1]} : vector<4x580xf32> to vector<4x324xf32>
    %10 = vector.extract_strided_slice %2 {offsets = [0, 146], sizes = [4, 324], strides = [1, 1]} : vector<4x580xf32> to vector<4x324xf32>
    %11 = vector.extract_strided_slice %2 {offsets = [0, 147], sizes = [4, 324], strides = [1, 1]} : vector<4x580xf32> to vector<4x324xf32>
    %12 = tpu.concatenate %3, %4, %5, %6, %7, %8, %9, %10, %11 in 0 : vector<4x324xf32>, vector<4x324xf32>, vector<4x324xf32>, vector<4x324xf32>, vector<4x324xf32>, vector<4x324xf32>, vector<4x324xf32>, vector<4x324xf32>, vector<4x324xf32> -> vector<36x324xf32>
    %c0_4 = arith.constant 0 : index
    %c0_5 = arith.constant 0 : index
    %13 = vector.load %arg2[%c0_4, %c0_5] : memref<8x36xf32, #tpu.memory_space<vmem>>, vector<8x36xf32>
    %cst = arith.constant dense<0.000000e+00> : vector<8x324xf32>
    %14 = tpu.matmul %13, %12, %cst {dimension_numbers = #tpu.dot_dimension_numbers<[1], [0], [0], [1], [0, 0, 1, 1], [], []>} : vector<8x36xf32>, vector<36x324xf32>, vector<8x324xf32> -> vector<8x324xf32>
    %c0_6 = arith.constant 0 : index
    %c0_7 = arith.constant 0 : index
    %15 = vector.load %arg4[%c0_6, %c0_7] : memref<8x6xf32, #tpu.memory_space<vmem>>, vector<8x1xf32>
    %16 = vector.broadcast %15 : vector<8x1xf32> to vector<8x324xf32>
    %17 = arith.addf %14, %16 : vector<8x324xf32>
    %18 = vector.broadcast %0 : vector<1x324xf32> to vector<8x324xf32>
    %19 = arith.mulf %17, %18 : vector<8x324xf32>
    %cst_8 = arith.constant dense<0.000000e+00> : vector<8xf32>
    %20 = vector.multi_reduction <add>, %19, %cst_8 [1] : vector<8x324xf32> to vector<8xf32>
    %21 = vector.shape_cast %20 : vector<8xf32> to vector<8x1xf32>
    %cst_9 = arith.constant 3.906250e-03 : f32
    %22 = vector.broadcast %cst_9 : f32 to vector<8x1xf32>
    %23 = arith.mulf %21, %22 : vector<8x1xf32>
    %24 = vector.broadcast %23 : vector<8x1xf32> to vector<8x324xf32>
    %25 = arith.subf %17, %24 : vector<8x324xf32>
    %26 = vector.broadcast %0 : vector<1x324xf32> to vector<8x324xf32>
    %27 = arith.mulf %25, %26 : vector<8x324xf32>
    %28 = arith.mulf %27, %27 : vector<8x324xf32>
    %cst_10 = arith.constant dense<0.000000e+00> : vector<8xf32>
    %29 = vector.multi_reduction <add>, %28, %cst_10 [1] : vector<8x324xf32> to vector<8xf32>
    %30 = vector.shape_cast %29 : vector<8xf32> to vector<8x1xf32>
    %cst_11 = arith.constant 3.906250e-03 : f32
    %31 = vector.broadcast %cst_11 : f32 to vector<8x1xf32>
    %32 = arith.mulf %30, %31 : vector<8x1xf32>
    %cst_12 = arith.constant 9.99999974E-6 : f32
    %33 = vector.broadcast %cst_12 : f32 to vector<8x1xf32>
    %34 = arith.addf %32, %33 : vector<8x1xf32>
    %35 = math.rsqrt %34 : vector<8x1xf32>
    %36 = vector.broadcast %35 : vector<8x1xf32> to vector<8x324xf32>
    %37 = arith.mulf %25, %36 : vector<8x324xf32>
    %c0_13 = arith.constant 0 : index
    %c1 = arith.constant 1 : index
    %38 = vector.load %arg4[%c0_13, %c1] : memref<8x6xf32, #tpu.memory_space<vmem>>, vector<8x1xf32>
    %39 = vector.broadcast %38 : vector<8x1xf32> to vector<8x324xf32>
    %40 = arith.mulf %37, %39 : vector<8x324xf32>
    %c0_14 = arith.constant 0 : index
    %c2 = arith.constant 2 : index
    %41 = vector.load %arg4[%c0_14, %c2] : memref<8x6xf32, #tpu.memory_space<vmem>>, vector<8x1xf32>
    %42 = vector.broadcast %41 : vector<8x1xf32> to vector<8x324xf32>
    %43 = arith.addf %40, %42 : vector<8x324xf32>
    %cst_15 = arith.constant 0.000000e+00 : f32
    %44 = vector.broadcast %cst_15 : f32 to vector<8x324xf32>
    %45 = arith.cmpf oge, %43, %44 : vector<8x324xf32>
    %cst_16 = arith.constant 2.000000e-01 : f32
    %46 = vector.broadcast %cst_16 : f32 to vector<8x324xf32>
    %47 = arith.mulf %46, %43 : vector<8x324xf32>
    %48 = arith.select %45, %43, %47 : vector<8x324xi1>, vector<8x324xf32>
    %cst_17 = arith.constant 0.000000e+00 : f32
    %49 = vector.broadcast %cst_17 : f32 to vector<8x580xf32>
    %c0_18 = arith.constant 0 : index
    %c0_19 = arith.constant 0 : index
    %50 = vector.load %arg7[%c0_18, %c0_19] : memref<8x580xf32, #tpu.memory_space<vmem>>, vector<8x580xf32>
    tpu.vector_store %arg7[%c0_18, %c0_19], %49 {strides = array<i32>} : memref<8x580xf32, #tpu.memory_space<vmem>>, vector<8x580xf32>,
    %51 = vector.broadcast %0 : vector<1x324xf32> to vector<8x324xf32>
    %52 = arith.mulf %48, %51 : vector<8x324xf32>
    %c0_20 = arith.constant 0 : index
    %c128 = arith.constant 128 : index
    %53 = vector.load %arg7[%c0_20, %c128] : memref<8x580xf32, #tpu.memory_space<vmem>>, vector<8x324xf32>
    tpu.vector_store %arg7[%c0_20, %c128], %52 {strides = array<i32>} : memref<8x580xf32, #tpu.memory_space<vmem>>, vector<8x324xf32>,
    %c0_21 = arith.constant 0 : index
    %c0_22 = arith.constant 0 : index
    %54 = vector.load %arg7[%c0_21, %c0_22] : memref<8x580xf32, #tpu.memory_space<vmem>>, vector<8x580xf32>
    %55 = vector.extract_strided_slice %54 {offsets = [0, 109], sizes = [8, 324], strides = [1, 1]} : vector<8x580xf32> to vector<8x324xf32>
    %56 = vector.extract_strided_slice %54 {offsets = [0, 110], sizes = [8, 324], strides = [1, 1]} : vector<8x580xf32> to vector<8x324xf32>
    %57 = vector.extract_strided_slice %54 {offsets = [0, 111], sizes = [8, 324], strides = [1, 1]} : vector<8x580xf32> to vector<8x324xf32>
    %58 = vector.extract_strided_slice %54 {offsets = [0, 127], sizes = [8, 324], strides = [1, 1]} : vector<8x580xf32> to vector<8x324xf32>
    %59 = vector.extract_strided_slice %54 {offsets = [0, 128], sizes = [8, 324], strides = [1, 1]} : vector<8x580xf32> to vector<8x324xf32>
    %60 = vector.extract_strided_slice %54 {offsets = [0, 129], sizes = [8, 324], strides = [1, 1]} : vector<8x580xf32> to vector<8x324xf32>
    %61 = vector.extract_strided_slice %54 {offsets = [0, 145], sizes = [8, 324], strides = [1, 1]} : vector<8x580xf32> to vector<8x324xf32>
    %62 = vector.extract_strided_slice %54 {offsets = [0, 146], sizes = [8, 324], strides = [1, 1]} : vector<8x580xf32> to vector<8x324xf32>
    %63 = vector.extract_strided_slice %54 {offsets = [0, 147], sizes = [8, 324], strides = [1, 1]} : vector<8x580xf32> to vector<8x324xf32>
    %64 = tpu.concatenate %55, %56, %57, %58, %59, %60, %61, %62, %63 in 0 : vector<8x324xf32>, vector<8x324xf32>, vector<8x324xf32>, vector<8x324xf32>, vector<8x324xf32>, vector<8x324xf32>, vector<8x324xf32>, vector<8x324xf32>, vector<8x324xf32> -> vector<72x324xf32>
    %c0_23 = arith.constant 0 : index
    %c0_24 = arith.constant 0 : index
    %65 = vector.load %arg3[%c0_23, %c0_24] : memref<8x72xf32, #tpu.memory_space<vmem>>, vector<8x72xf32>
    %cst_25 = arith.constant dense<0.000000e+00> : vector<8x324xf32>
    %66 = tpu.matmul %65, %64, %cst_25 {dimension_numbers = #tpu.dot_dimension_numbers<[1], [0], [0], [1], [0, 0, 1, 1], [], []>} : vector<8x72xf32>, vector<72x324xf32>, vector<8x324xf32> -> vector<8x324xf32>
    %c0_26 = arith.constant 0 : index
    %c3 = arith.constant 3 : index
    %67 = vector.load %arg4[%c0_26, %c3] : memref<8x6xf32, #tpu.memory_space<vmem>>, vector<8x1xf32>
    %68 = vector.broadcast %67 : vector<8x1xf32> to vector<8x324xf32>
    %69 = arith.addf %66, %68 : vector<8x324xf32>
    %70 = vector.broadcast %0 : vector<1x324xf32> to vector<8x324xf32>
    %71 = arith.mulf %69, %70 : vector<8x324xf32>
    %cst_27 = arith.constant dense<0.000000e+00> : vector<8xf32>
    %72 = vector.multi_reduction <add>, %71, %cst_27 [1] : vector<8x324xf32> to vector<8xf32>
    %73 = vector.shape_cast %72 : vector<8xf32> to vector<8x1xf32>
    %cst_28 = arith.constant 3.906250e-03 : f32
    %74 = vector.broadcast %cst_28 : f32 to vector<8x1xf32>
    %75 = arith.mulf %73, %74 : vector<8x1xf32>
    %76 = vector.broadcast %75 : vector<8x1xf32> to vector<8x324xf32>
    %77 = arith.subf %69, %76 : vector<8x324xf32>
    %78 = vector.broadcast %0 : vector<1x324xf32> to vector<8x324xf32>
    %79 = arith.mulf %77, %78 : vector<8x324xf32>
    %80 = arith.mulf %79, %79 : vector<8x324xf32>
    %cst_29 = arith.constant dense<0.000000e+00> : vector<8xf32>
    %81 = vector.multi_reduction <add>, %80, %cst_29 [1] : vector<8x324xf32> to vector<8xf32>
    %82 = vector.shape_cast %81 : vector<8xf32> to vector<8x1xf32>
    %cst_30 = arith.constant 3.906250e-03 : f32
    %83 = vector.broadcast %cst_30 : f32 to vector<8x1xf32>
    %84 = arith.mulf %82, %83 : vector<8x1xf32>
    %cst_31 = arith.constant 9.99999974E-6 : f32
    %85 = vector.broadcast %cst_31 : f32 to vector<8x1xf32>
    %86 = arith.addf %84, %85 : vector<8x1xf32>
    %87 = math.rsqrt %86 : vector<8x1xf32>
    %88 = vector.broadcast %87 : vector<8x1xf32> to vector<8x324xf32>
    %89 = arith.mulf %77, %88 : vector<8x324xf32>
    %c0_32 = arith.constant 0 : index
    %c4 = arith.constant 4 : index
    %90 = vector.load %arg4[%c0_32, %c4] : memref<8x6xf32, #tpu.memory_space<vmem>>, vector<8x1xf32>
    %91 = vector.broadcast %90 : vector<8x1xf32> to vector<8x324xf32>
    %92 = arith.mulf %89, %91 : vector<8x324xf32>
    %c0_33 = arith.constant 0 : index
    %c5 = arith.constant 5 : index
    %93 = vector.load %arg4[%c0_33, %c5] : memref<8x6xf32, #tpu.memory_space<vmem>>, vector<8x1xf32>
    %94 = vector.broadcast %93 : vector<8x1xf32> to vector<8x324xf32>
    %95 = arith.addf %92, %94 : vector<8x324xf32>
    %cst_34 = arith.constant 0.000000e+00 : f32
    %96 = vector.broadcast %cst_34 : f32 to vector<8x324xf32>
    %97 = arith.cmpf oge, %95, %96 : vector<8x324xf32>
    %cst_35 = arith.constant 2.000000e-01 : f32
    %98 = vector.broadcast %cst_35 : f32 to vector<8x324xf32>
    %99 = arith.mulf %98, %95 : vector<8x324xf32>
    %100 = arith.select %97, %95, %99 : vector<8x324xi1>, vector<8x324xf32>
    %c0_36 = arith.constant 0 : index
    %c0_37 = arith.constant 0 : index
    %c0_38 = arith.constant 0 : index
    %101 = vector.load %arg6[%c0_36, %c0_37, %c0_38] : memref<1x8x324xf32, #tpu.memory_space<vmem>>, vector<1x8x324xf32>
    %102 = vector.shape_cast %101 : vector<1x8x324xf32> to vector<8x324xf32>
    %103 = vector.shape_cast %100 : vector<8x324xf32> to vector<1x8x324xf32>
    tpu.vector_store %arg6[%c0_36, %c0_37, %c0_38], %103 {strides = array<i32>} : memref<1x8x324xf32, #tpu.memory_space<vmem>>, vector<1x8x324xf32>,
    return
  }
  func.func @transform_0(%arg0: i32) -> (i32, i32, i32) {
    %c0_i32 = arith.constant 0 : i32
    %c0_i32_0 = arith.constant 0 : i32
    %c0_i32_1 = arith.constant 0 : i32
    return %arg0, %c0_i32, %c0_i32_0 : i32, i32, i32
  }
  func.func @transform_1(%arg0: i32) -> (i32, i32) {
    %c0_i32 = arith.constant 0 : i32
    %c0_i32_0 = arith.constant 0 : i32
    %c0_i32_1 = arith.constant 0 : i32
    return %c0_i32, %c0_i32_0 : i32, i32
  }
  func.func @transform_2(%arg0: i32) -> (i32, i32) {
    %c0_i32 = arith.constant 0 : i32
    %c0_i32_0 = arith.constant 0 : i32
    %c0_i32_1 = arith.constant 0 : i32
    return %c0_i32, %c0_i32_0 : i32, i32
  }
  func.func @transform_3(%arg0: i32) -> (i32, i32) {
    %c0_i32 = arith.constant 0 : i32
    %c0_i32_0 = arith.constant 0 : i32
    %c0_i32_1 = arith.constant 0 : i32
    return %c0_i32, %c0_i32_0 : i32, i32
  }
  func.func @transform_4(%arg0: i32) -> (i32, i32) {
    %c0_i32 = arith.constant 0 : i32
    %c0_i32_0 = arith.constant 0 : i32
    %c0_i32_1 = arith.constant 0 : i32
    return %c0_i32, %c0_i32_0 : i32, i32
  }
  func.func @transform_5(%arg0: i32) -> (i32, i32, i32) {
    %c0_i32 = arith.constant 0 : i32
    %c0_i32_0 = arith.constant 0 : i32
    %c0_i32_1 = arith.constant 0 : i32
    return %arg0, %c0_i32, %c0_i32_0 : i32, i32, i32
  }
}

</mosaic_0001>

<bundles_post_ra>
// kernel: conv_block.1
= control target key start
LH: loop header
LB: loop body
LE: loop exit
PB: predicated region body
PF: predicated region fallthrough
CT: control target
= control target key end

     0   :  { %s1580_s18 = smov 0   ;;  %s1904_s0 = inlined_call_operand.vmem [shape: f32[2,4,580], index: 0, kind: input, shape index: {}]   ;;  %s1905_s1 = inlined_call_operand.vmem [shape: f32[8,36], index: 1, kind: input, shape index: {}]   ;;  %s1906_s2 = inlined_call_operand.vmem [shape: f32[8,72], index: 2, kind: input, shape index: {}]   ;;  %s1907_s3 = inlined_call_operand.vmem [shape: f32[8,6], index: 3, kind: input, shape index: {}]   ;;  %s1908_s4 = inlined_call_operand.vmem [shape: f32[1,324], index: 4, kind: input, shape index: {}]   ;;  %s1909_s5 = inlined_call_operand.vmem [shape: f32[2,8,324], index: 5, kind: output, shape index: {}]  }
   0x1 LB: > { %s1153_s19 = sadd.s32 4294967295, %s1530_s18   ;;  %p1157_p0 = scmp.ge.s32.totalorder %s1530_s18, 1  ;;  %s1530_s18 = sphi %s1580_s18, %s15_s18  }
   0x2   : > { %p187_p1 = scmp.lt.s32.totalorder %s1530_s18, 3 }
   0x4   : > { %p188_p2 = pnand %p1157_p0, %p187_p1 }
   0x5   : > { %p215_p3 = scmp.lt.s32.totalorder (!%p188_p2), %s1153_s19, 1  ;;  %s1532_s24 = smov (!%p188_p2), 127   ;;  %vm260_vm0 = vcmask (!%p188_p2), 1031168   ;;  %vm276_vm1 = vcmask (!%p188_p2), 900096   ;;  %vm345_vm2 = vcmask (!%p188_p2), 1043456   ;;  %vm244_vm3 = vcmask (!%p188_p2), 1039360  }
   0x6   : > { %191 = sbr.rel (%p188_p2) target bundleno = 1685 (0x695), region = 40  ;;  %s1533_s25 = smov (!%p188_p2), 126   ;;  %vm316_vm4 = vcmask (!%p188_p2), 752640   ;;  %vm329_vm5 = vcmask (!%p188_p2), 744448   ;;  %v1541_v55 = vmov (!%p188_p2), 0.0|0.0   ;;  %vm303_vm6 = vcmask (!%p188_p2), 883712  }
   0x7   : > { %s1534_s26 = smov (!%p188_p2), 110   ;;  %s1535_s27 = smov (!%p188_p2), 109   ;;  %1227 = vmatprep.subr.bf16.mxu1 (!%p188_p2), %v1541_v55  ;;  %vm290_vm7 = vcmask (!%p188_p2), 891904   ;;  %vm342_vm8 = vcmask (!%p188_p2), 736256   ;;  %vm1543_vm9 = vmmov (!%p188_p2), 0   ;;  %vm425_vm10 = vcmask (!%p188_p2), 154624  }
   0x8   : > { %s1536_s28 = smov (!%p188_p2), 108   ;;  %s1537_s29 = smov (!%p188_p2), 92   ;;  %vm453_vm11 = vcmask (!%p188_p2), 293888   ;;  %vm624_vm12 = vcmask (!%p188_p2), 556032  }
   0x9   : > { %s1538_s30 = smov (!%p188_p2), 91   ;;  %s1539_s6 = smov (!%p188_p2), 90  }
   0xa   : > { %s1540_s7 = smov (!%p188_p2), 19  }
   0xd   : > { %s1911_s19 = smov (!%p215_p3, %s1153_s19), 1 }
   0xe   : > { %s1261_s20 = smul.u32 20, %s1911_s19 }
   0xf   : > { %s1262_s16 = smul.u32 24, %s1911_s19 }
  0x10   : > { %s219_s23 = scalar_lea.vmem %s1904_s0, %s1261_s20 }
  0x11   : > { %v1594_v0 = vld [vmem:[%s219_s23] sm:$0xff]  ;;  %v1596_v1 = vld [vmem:[%s219_s23 + $0x8] sm:$0xff]  ;;  %s224_s21 = scalar_lea.vmem %s1909_s5, %s1262_s16 }
  0x12   : > { %v235_v2 = vcombine.low %v1596_v1, %v1596_v1  ;;  %v1602_v3 = vcombine.high %v1594_v0, %v1594_v0  ;;  %v234_v4 = vcombine.low %v1594_v0, %v1594_v0  ;;  %v231_v5 = vcombine.high %v1596_v1, %v1596_v1 }
  0x14   : > { %v1289_v6 = vpack.i.bf16 %v235_v2, %v1594_v0  ;;  %v1299_v7 = vpack.i.bf16 %v1596_v1, %v1602_v3  ;;  %v1294_v8 = vpack.i.bf16 %v234_v4, %v1596_v1  ;;  %v1304_v9 = vpack.i.bf16 %v1594_v0, %v231_v5 }
  0x16   : > { %1290 = vrot.lane.b32.xlu0 %v1289_v6, %s1532_s24  ;;  %1300 = vrot.lane.b32.xlu1 %v1299_v7, %s1533_s25 }
  0x1a   : > { %1295 = vrot.lane.b32.xlu0 %v1294_v8, %s1532_s24  ;;  %1305 = vrot.lane.b32.xlu1 %v1304_v9, %s1533_s25 }
  0x1e   : > { %1310 = vrot.lane.b32.xlu0 %v1289_v6, %s1534_s26  ;;  %1315 = vrot.lane.b32.xlu1 %v1294_v8, %s1534_s26 }
  0x22   : > { %1320 = vrot.lane.b32.xlu0 %v1299_v7, %s1535_s27  ;;  %288 = vrot.lane.b32.xlu1 %v231_v5, %s1535_s27 }
  0x26   : > { %1325 = vrot.lane.b32.xlu0 %v1289_v6, %s1536_s28  ;;  %301 = vrot.lane.b32.xlu1 %v1596_v1, %s1536_s28 }
  0x2a   : > { %1330 = vrot.lane.b32.xlu0 %v1299_v7, %s1537_s29  ;;  %314 = vrot.lane.b32.xlu1 %v231_v5, %s1537_s29 }
  0x2e   : > { %1335 = vrot.lane.b32.xlu0 %v1289_v6, %s1538_s30  ;;  %327 = vrot.lane.b32.xlu1 %v1596_v1, %s1538_s30 }
  0x32   : > { %336 = vrot.lane.b32.xlu0 %v1602_v3, %s1539_s6  ;;  %338 = vrot.lane.b32.xlu1 %v1596_v1, %s1539_s6 }
  0x36   : > { %340 = vrot.lane.b32.xlu0 %v231_v5, %s1539_s6 }
  0x88   : > { %v1634_v10 = vpop.permute.xlu0 %1290  ;;  %v1636_v11 = vpop.permute.xlu1 %1300 }
  0x89   : > { %v1303_v14 = vunpack.i.h.bf16 %v1636_v11  ;;  %v1302_v15 = vunpack.i.l.bf16 %v1636_v11  ;;  %v1293_v37 = vunpack.i.h.bf16 %v1634_v10  ;;  %v1292_v38 = vunpack.i.l.bf16 %v1634_v10 }
  0x8b   : > { %v262_v23 = vsel %vm260_vm0, %v1302_v15, %v1303_v14  ;;  %v246_v44 = vsel %vm244_vm3, %v1292_v38, %v1293_v37 }
  0x8c   : > { %v1638_v12 = vpop.permute.xlu0 %1295  ;;  %v1640_v13 = vpop.permute.xlu1 %1305  ;;  %v347_v11 = vsel %vm345_vm2, %v1602_v3, %v246_v44 }
  0x8d   : > { %v1307_v16 = vunpack.i.l.bf16 %v1640_v13  ;;  %v1297_v17 = vunpack.i.l.bf16 %v1638_v12  ;;  %v1308_v47 = vunpack.i.h.bf16 %v1640_v13  ;;  %v1298_v60 = vunpack.i.h.bf16 %v1638_v12 }
  0x8f   : > { %v263_v24 = vsel %vm260_vm0, %v1303_v14, %v1307_v16  ;;  %v349_v27 = vsel %vm345_vm2, %v231_v5, %v1297_v17  ;;  %v247_v50 = vsel %vm244_vm3, %v1293_v37, %v1297_v17  ;;  %v261_v4 = vsel %vm260_vm0, %v1308_v47, %v1302_v15 }
  0x90   : > { %v1311_v18 = vpop.permute.xlu0 %1310  ;;  %v1316_v19 = vpop.permute.xlu1 %1315  ;;  %v348_v6 = vsel %vm345_vm2, %v1596_v1, %v247_v50  ;;  %v245_v12 = vsel %vm244_vm3, %v1298_v60, %v1292_v38 }
  0x91   : > { %v1313_v20 = vunpack.i.h.bf16 %v1311_v18  ;;  %v1312_v21 = vunpack.i.l.bf16 %v1311_v18  ;;  %v1317_v22 = vunpack.i.l.bf16 %v1316_v19  ;;  %v1318_v51 = vunpack.i.h.bf16 %v1316_v19 }
  0x92   : > { %v1349_v13 = vpack.i.bf16 %v348_v6, %v347_v11  ;;  %v346_v3 = vsel %vm345_vm2, %v1594_v0, %v245_v12 }
  0x93   : > { %v278_v25 = vsel %vm276_vm1, %v1312_v21, %v1313_v20  ;;  %v279_v26 = vsel %vm276_vm1, %v1313_v20, %v1317_v22  ;;  %v353_v28 = vsel %vm345_vm2, %v1307_v16, %v1317_v22  ;;  %v277_v7 = vsel %vm276_vm1, %v1318_v51, %v1312_v21 }
  0x94   : > { %v1652_v29 = vpop.permute.xlu0 %1320  ;;  %v1654_v30 = vpop.permute.xlu1 %288  ;;  %v1339_v31 = vpack.i.bf16 %v353_v28, %v349_v27  ;;  %v351_v32 = vsel %vm345_vm2, %v262_v23, %v278_v25  ;;  %v352_v33 = vsel %vm345_vm2, %v263_v24, %v279_v26  ;;  %v350_v15 = vsel %vm345_vm2, %v261_v4, %v277_v7 }
  0x95   : > { %v1354_v36 = vpack.i.bf16 %v352_v33, %v351_v32  ;;  %v1322_v45 = vunpack.i.l.bf16 %v1652_v29  ;;  %v1323_v1 = vunpack.i.h.bf16 %v1652_v29  ;;  %v1359_v21 = vpack.i.bf16 %v350_v15, %v346_v3  ;;  %v1716_v29 = vld [vmem:[%s1907_s3] sm:$0xff] }
  0x96   : > { %1340 = vrot.lane.b32.xlu0 %v1339_v31, %s1540_s7  ;;  %v1542_v26 = vmov 0.0   ;;  %v1544_v27 = vmov 0  }
  0x97   : > { %v292_v20 = vsel %vm290_vm7, %v1323_v1, %v1654_v30  ;;  %v291_v22 = vsel %vm290_vm7, %v1322_v45, %v1323_v1  ;;  %676 = vst [vmem:[#allocation2 + $0x18] sm:$0xff] %v1542_v26  ;;  %527 = vmatprep.mubr.f32.mxu0 %v1542_v26  ;;  %1195 = vmatprep.mubr.msk.f32.mxu1 %vm1543_vm9, %v1542_v26 }
  0x98   : > { %v1326_v34 = vpop.permute.xlu0 %1325  ;;  %v302_v35 = vpop.permute.xlu1 %301  ;;  %1379 = vset.pattern.permute.xlu1 %v1544_v27 }
  0x99   : > { %v1327_v41 = vunpack.i.l.bf16 %v1326_v34  ;;  %v1328_v8 = vunpack.i.h.bf16 %v1326_v34  ;;  %v357_v9 = vsel %vm345_vm2, %v1654_v30, %v302_v35 }
  0x9a   : > { %1355 = vrot.lane.b32.xlu0 %v1354_v36, %s1540_s7 }
  0x9b   : > { %v354_v54 = vsel %vm345_vm2, %v1322_v45, %v1327_v41  ;;  %v305_v18 = vsel %vm303_vm6, %v1328_v8, %v302_v35  ;;  %v304_v19 = vsel %vm303_vm6, %v1327_v41, %v1328_v8 }
  0x9c   : > { %v1331_v39 = vpop.permute.xlu0 %1330  ;;  %v315_v40 = vpop.permute.xlu1 %314  ;;  %v356_v24 = vsel %vm345_vm2, %v292_v20, %v305_v18  ;;  %v355_v25 = vsel %vm345_vm2, %v291_v22, %v304_v19  ;;  %v605_v19 = vlaneseq }
  0x9d   : > { %v1333_v42 = vunpack.i.h.bf16 %v1331_v39  ;;  %v1332_v43 = vunpack.i.l.bf16 %v1331_v39  ;;  %v1364_v0 = vpack.i.bf16 %v356_v24, %v355_v25 }
  0x9e   : > { %v606_v3 = vshrl.u32 %v605_v19, 7 }
  0x9f   : > { %v318_v52 = vsel %vm316_vm4, %v1333_v42, %v315_v40  ;;  %v317_v58 = vsel %vm316_vm4, %v1332_v43, %v1333_v42 }
  0xa0   : > { %v1336_v46 = vpop.permute.xlu0 %1335  ;;  %v328_v53 = vpop.permute.xlu1 %327  ;;  %v615_v20 = vsub.s32 2, %v606_v3  ;;  %v607_v22 = vsub.s32 0, %v606_v3 }
  0xa1   : > { %v1338_v48 = vunpack.i.h.bf16 %v1336_v46  ;;  %v1337_v49 = vunpack.i.l.bf16 %v1336_v46  ;;  %v361_v10 = vsel %vm345_vm2, %v315_v40, %v328_v53 }
  0xa2   : > { %v1374_v14 = vpack.i.bf16 %v361_v10, %v357_v9 }
  0xa3   : > { %v331_v56 = vsel %vm329_vm5, %v1338_v48, %v328_v53  ;;  %v358_v57 = vsel %vm345_vm2, %v1332_v43, %v1337_v49  ;;  %v330_v59 = vsel %vm329_vm5, %v1337_v49, %v1338_v48 }
  0xa4   : > { %v360_v61 = vsel %vm345_vm2, %v318_v52, %v331_v56  ;;  %v1344_v62 = vpack.i.bf16 %v358_v57, %v354_v54  ;;  %v359_v63 = vsel %vm345_vm2, %v317_v58, %v330_v59  ;;  %v337_v2 = vpop.permute.xlu0 %336  ;;  %v339_v17 = vpop.permute.xlu1 %338 }
  0xa5   : > { %v1369_v5 = vpack.i.bf16 %v360_v61, %v359_v63  ;;  %v343_v28 = vsel %vm342_vm8, %v337_v2, %v339_v17 }
  0xa6   : > { %1345 = vrot.lane.b32.xlu1 %v1344_v62, %s1540_s7 }
  0xa7   : > { %1370 = vrot.lane.b32.xlu0 %v1369_v5, %s1540_s7 }
  0xa8   : > { %v341_v16 = vpop.permute.xlu0 %340 }
  0xa9   : > { %v344_v23 = vsel %vm342_vm8, %v339_v17, %v341_v16 }
  0xaa   : > { %1350 = vrot.lane.b32.xlu1 %v1349_v13, %s1540_s7 }
  0xab   : > { %1375 = vrot.lane.b32.xlu0 %v1374_v14, %s1540_s7 }
  0xae   : > { %1360 = vrot.lane.b32.xlu1 %v1359_v21, %s1540_s7  ;;  %v225_v21 = vld [vmem:[%s1908_s4] sm:$0x7] }
  0xaf   : > { %421 = vrot.lane.b32.xlu0 %v344_v23, %s1540_s7  ;;  %v611_v23 = vsub.s32 1, %v606_v3  ;;  %v1749_v25 = vrot.slane %v225_v21, %v615_v20 }
  0xb2   : > { %1365 = vrot.lane.b32.xlu1 %v1364_v0, %s1540_s7  ;;  %v1751_v0 = vrot.slane %v225_v21, %v607_v22 }
  0xb3   : > { %423 = vrot.lane.b32.xlu0 %v341_v16, %s1540_s7  ;;  %v362_v16 = vld [vmem:[%s1905_s1] sm:$0xff] }
  0xb6   : > { %419 = vrot.lane.b32.xlu1 %v343_v28, %s1540_s7 }
  0xba   : > { %417 = vrot.lane.b32.xlu1 %v337_v2, %s1540_s7 }
  0xbe   : > { %366 = vperm.xlu1 %1379, %v1716_v29  }
 0x108   : > { %v1341_v30 = vpop.permute.xlu0 %1340 }
 0x109   : > { %v1343_v37 = vunpack.i.h.bf16 %v1341_v30  ;;  %v1342_v38 = vunpack.i.l.bf16 %v1341_v30  ;;  %v1753_v30 = vrot.slane %v225_v21, %v611_v23 }
 0x10c   : > { %v1356_v31 = vpop.permute.xlu0 %1355 }
 0x10d   : > { %v1358_v34 = vunpack.i.h.bf16 %v1356_v31  ;;  %v1357_v35 = vunpack.i.l.bf16 %v1356_v31 }
 0x10f   : > { %v430_v42 = vsel %vm425_vm10, %v1357_v35, %v1358_v34  ;;  %v431_v44 = vsel %vm425_vm10, %v1358_v34, %v1343_v37 }
 0x118   : > { %v1346_v32 = vpop.permute.xlu1 %1345 }
 0x119   : > { %v1371_v33 = vpop.permute.xlu0 %1370  ;;  %v1348_v51 = vunpack.i.h.bf16 %v1346_v32  ;;  %v1347_v61 = vunpack.i.l.bf16 %v1346_v32 }
 0x11a   : > { %v1373_v52 = vunpack.i.h.bf16 %v1371_v33  ;;  %v1372_v53 = vunpack.i.l.bf16 %v1371_v33 }
 0x11c   : > { %v1351_v36 = vpop.permute.xlu1 %1350  ;;  %v436_v4 = vsel %vm425_vm10, %v1372_v53, %v1373_v52  ;;  %v435_v5 = vsel %vm425_vm10, %v1348_v51, %v1372_v53 }
 0x11d   : > { %v1353_v39 = vunpack.i.h.bf16 %v1351_v36  ;;  %v1352_v40 = vunpack.i.l.bf16 %v1351_v36  ;;  %v1376_v45 = vpop.permute.xlu0 %1375 }
 0x11e   : > { %v1378_v54 = vunpack.i.h.bf16 %v1376_v45  ;;  %v1377_v62 = vunpack.i.l.bf16 %v1376_v45 }
 0x11f   : > { %v427_v41 = vsel %vm425_vm10, %v1352_v40, %v1353_v39  ;;  %v428_v43 = vsel %vm425_vm10, %v1353_v39, %v1342_v38 }
 0x120   : > { %v1361_v46 = vpop.permute.xlu1 %1360  ;;  %v1219_v47 = vpack.c.bf16 %v430_v42, %v427_v41  ;;  %v1228_v48 = vpack.c.bf16 %v431_v44, %v428_v43  ;;  %v437_v8 = vsel %vm425_vm10, %v1373_v52, %v1378_v54  ;;  %v1545_v42 = vmov 1  }
 0x121   : > { %v1363_v49 = vunpack.i.h.bf16 %v1361_v46  ;;  %v1362_v50 = vunpack.i.l.bf16 %v1361_v46  ;;  %v422_v59 = vpop.permute.xlu0 %421  ;;  %1380 = vset.pattern.permute.xlu0 %v1545_v42  ;;  %v1546_v43 = vmov 2  }
 0x122   : > { %1220 = vmatprep.subr.bf16.mxu0 %v1219_v47  ;;  %1229 = vmatpush3.bf16.msra.mxu1 %v1228_v48 }
 0x123   : > { %v426_v56 = vsel %vm425_vm10, %v1362_v50, %v1352_v40  ;;  %v429_v57 = vsel %vm425_vm10, %v1363_v49, %v1357_v35  ;;  %1230 = vmatprep.subr.bf16.mxu1 %v1541_v55  ;;  %1381 = vset.pattern.permute.xlu1 %v1546_v43 }
 0x124   : > { %v1366_v58 = vpop.permute.xlu1 %1365  ;;  %v1221_v60 = vpack.c.bf16 %v429_v57, %v426_v56 }
 0x125   : > { %v1368_v63 = vunpack.i.h.bf16 %v1366_v58  ;;  %v1367_v2 = vunpack.i.l.bf16 %v1366_v58  ;;  %v424_v13 = vpop.permute.xlu0 %423 }
 0x126   : > { %1222 = vmatpush1.bf16.msra.mxu0 %v1221_v60  ;;  %v440_v17 = vsel %vm425_vm10, %v422_v59, %v424_v13 }
 0x127   : > { %v433_v6 = vsel %vm425_vm10, %v1367_v2, %v1368_v63  ;;  %v434_v7 = vsel %vm425_vm10, %v1368_v63, %v1377_v62  ;;  %v432_v9 = vsel %vm425_vm10, %v1347_v61, %v1367_v2 }
 0x128   : > { %v420_v10 = vpop.permute.xlu1 %419  ;;  %v1223_v11 = vpack.c.bf16 %v436_v4, %v433_v6  ;;  %v1231_v12 = vpack.c.bf16 %v437_v8, %v434_v7  ;;  %v1225_v1 = vpack.c.bf16 %v435_v5, %v432_v9 }
 0x129   : > { %v439_v14 = vsel %vm425_vm10, %v420_v10, %v422_v59 }
 0x12a   : > { %1224 = vmatprep.subr.bf16.mxu0 %v1223_v11  ;;  %1232 = vmatpush3.bf16.msra.mxu1 %v1231_v12 }
 0x12b   : > { %1226 = vmatpush1.bf16.msra.mxu0 %v1225_v1  ;;  %1193 = vmatprep.subr.mxu1 %v1542_v26 }
 0x12c   : > { %v418_v15 = vpop.permute.xlu1 %417  ;;  %1160 = vmatprep.subr.msk.mxu0 %vm345_vm2, %v439_v14 }
 0x12d   : > { %v438_v18 = vsel %vm425_vm10, %v418_v15, %v420_v10 }
 0x12e   : > { %1194 = vmatpush3.msk.msra.mxu1 %vm345_vm2, %v440_v17 }
 0x12f   : > { %1161 = vmatpush1.msk.msra.mxu0 %vm345_vm2, %v438_v18  ;;  %1196 = vmatmul.mubr.msk.f32.vlgmr.msra.gmra.mrb[0].mxu1 %vm453_vm11, %v362_v16 }
 0x130   : > { %1162 = vmatmul.mubr.msk.f32.vlgmr.msra.gmra.mrb[0].mxu0 %vm453_vm11, %v362_v16  ;;  %1249 = vmatprep.subr.bf16.mxu1 %v1541_v55 }
 0x131   : > { %966 = vmatprep.mubr.f32.mxu0 %v1542_v26  ;;  %1216 = vmatprep.mubr.msk.f32.mxu1 %vm1543_vm9, %v1542_v26 }
 0x13d   : > { %v367_v24 = vpop.permute.xlu1 %366 }
 0x202   : > { %v600_v27 = vpop.f32.mrb[0].mxu1 }
 0x203   : > { %v529_v28 = vpop.f32.mrb[0].mxu0  ;;  %v601_v31 = vadd.f32 %v600_v27, %v367_v24  ;;  %v1197_v32 = vpop.f32.mrb[1].mxu1 }
 0x204   : > { %v530_v33 = vadd.f32 %v529_v28, %v367_v24  ;;  %v531_v34 = vpop.f32.mrb[1].mxu0 }
 0x205   : > { %v532_v35 = vadd.f32 %v531_v34, %v367_v24  ;;  %v622_v36 = vmul.f32 %v1749_v25, %v601_v31 }
 0x206   : > { %v620_v37 = vmul.f32 %v1751_v0, %v530_v33 }
 0x207   : > { %v621_v38 = vmul.f32 %v1753_v30, %v532_v35  ;;  %v625_v39 = vsel %vm624_vm12, %v622_v36, 0.0 }
 0x209   : > { %v623_v40 = vadd.f32 %v621_v38, %v620_v37 }
 0x20b   : > { %v626_v41 = vadd.f32 %v625_v39, %v623_v40 }
 0x20d   : > { %627 = vadd.xlane.f32.xlu0 %v626_v41 }
 0x223   : > { %651 = vperm.xlu0 %1380, %v1716_v29  }
 0x29a   : > { %v628_v44 = vpop.xlane.xlu0 %627 }
 0x29b   : > { %v629_v45 = vmul.f32 0.00390625, %v628_v44 }
 0x29d   : > { %v630_v46 = vsub.f32 %v530_v33, %v629_v45  ;;  %v631_v47 = vsub.f32 %v532_v35, %v629_v45  ;;  %v632_v48 = vsub.f32 %v601_v31, %v629_v45 }
 0x29f   : > { %v633_v49 = vmul.f32 %v630_v46, %v1751_v0  ;;  %v634_v50 = vmul.f32 %v631_v47, %v1753_v30  ;;  %v635_v51 = vmul.f32 %v632_v48, %v1749_v25 }
 0x2a1   : > { %v636_v52 = vmul.f32 %v633_v49, %v633_v49  ;;  %v637_v53 = vmul.f32 %v634_v50, %v634_v50  ;;  %v638_v54 = vmul.f32 %v635_v51, %v635_v51 }
 0x2a2   : > { %v652_v63 = vpop.permute.xlu0 %651 }
 0x2a3   : > { %v639_v56 = vadd.f32 %v637_v53, %v636_v52  ;;  %v640_v57 = vsel %vm624_vm12, %v638_v54, 0.0 }
 0x2a5   : > { %v641_v58 = vadd.f32 %v640_v57, %v639_v56 }
 0x2a7   : > { %642 = vadd.xlane.f32.xlu1 %v641_v58 }
 0x2b8   : > { %658 = vperm.xlu1 %1381, %v1716_v29  }
 0x334   : > { %v643_v59 = vpop.xlane.xlu1 %642 }
 0x335   : > { %v644_v60 = vmul.f32 0.00390625, %v643_v59 }
 0x337   : > { %v645_v61 = vadd.f32 1e-05, %v644_v60 }
 0x338   : > { %v659_v6 = vpop.permute.xlu1 %658 }
 0x339   : > { %1520 = vrsqrt.f32 %v645_v61 }
 0x343   : > { %v1521_v62 = vpop.eup %1520 }
 0x344   : > { %v647_v2 = vmul.f32 %v1521_v62, %v630_v46  ;;  %v648_v4 = vmul.f32 %v1521_v62, %v631_v47  ;;  %v649_v5 = vmul.f32 %v1521_v62, %v632_v48 }
 0x346   : > { %v654_v7 = vmul.f32 %v652_v63, %v647_v2  ;;  %v655_v8 = vmul.f32 %v652_v63, %v648_v4  ;;  %v656_v9 = vmul.f32 %v652_v63, %v649_v5 }
 0x348   : > { %v661_v10 = vadd.f32 %v659_v6, %v654_v7  ;;  %v662_v11 = vadd.f32 %v659_v6, %v655_v8  ;;  %v663_v12 = vadd.f32 %v659_v6, %v656_v9 }
 0x34a   : > { %vm664_vm13 = vcmp.ge.f32.partialorder %v661_v10, 0.0  ;;  %vm665_vm14 = vcmp.ge.f32.partialorder %v662_v11, 0.0  ;;  %vm666_vm15 = vcmp.ge.f32.partialorder %v663_v12, 0.0  ;;  %v667_v1 = vmul.f32 0.2, %v661_v10 }
 0x34b   : > { %v668_v13 = vmul.f32 0.2, %v662_v11  ;;  %v669_v14 = vmul.f32 0.2, %v663_v12 }
 0x34c   : > { %v670_v15 = vsel %vm664_vm13, %v661_v10, %v667_v1 }
 0x34d   : > { %v671_v16 = vsel %vm665_vm14, %v662_v11, %v668_v13  ;;  %v672_v17 = vsel %vm666_vm15, %v663_v12, %v669_v14  ;;  %v678_v18 = vmul.f32 %v670_v15, %v1751_v0 }
 0x34e   : > { %v679_v19 = vmul.f32 %v671_v16, %v1753_v30  ;;  %v680_v3 = vmul.f32 %v672_v17, %v1749_v25 }
 0x350   : > { %683 = vst.msk [vmem:[#allocation2 + $0x18] sm:$0xff] %vm624_vm12, %v680_v3  ;;  %v1412_v20 = vpack.i.bf16 %v679_v19, %v678_v18 }
 0x352   : > { %1413 = vrot.lane.b32.xlu0 %v1412_v20, %s1535_s27  ;;  %1383 = vrot.lane.b32.xlu1 %v1412_v20, %s1532_s24 }
 0x356   : > { %1418 = vrot.lane.b32.xlu0 %v1412_v20, %s1536_s28 }
 0x357   : > { %v687_v21 = vld [vmem:[#allocation2 + $0x18] sm:$0xff] }
 0x358   : > { %v1387_v22 = vpack.i.bf16 %v1542_v26, %v687_v21 }
 0x35a   : > { %1388 = vrot.lane.b32.xlu1 %v1387_v22, %s1532_s24  ;;  %1423 = vrot.lane.b32.xlu0 %v1412_v20, %s1537_s29 }
 0x35e   : > { %1393 = vrot.lane.b32.xlu1 %v1412_v20, %s1533_s25  ;;  %1428 = vrot.lane.b32.xlu0 %v1412_v20, %s1538_s30 }
 0x362   : > { %1398 = vrot.lane.b32.xlu1 %v1387_v22, %s1533_s25  ;;  %757 = vrot.lane.b32.xlu0 %v678_v18, %s1539_s6 }
 0x366   : > { %1403 = vrot.lane.b32.xlu1 %v1412_v20, %s1534_s26  ;;  %761 = vrot.lane.b32.xlu0 %v687_v21, %s1539_s6 }
 0x36a   : > { %1408 = vrot.lane.b32.xlu1 %v1387_v22, %s1534_s26 }
 0x36e   : > { %729 = vrot.lane.b32.xlu1 %v687_v21, %s1535_s27 }
 0x372   : > { %737 = vrot.lane.b32.xlu1 %v687_v21, %s1536_s28 }
 0x376   : > { %745 = vrot.lane.b32.xlu1 %v687_v21, %s1537_s29 }
 0x37a   : > { %753 = vrot.lane.b32.xlu1 %v687_v21, %s1538_s30 }
 0x37e   : > { %759 = vrot.lane.b32.xlu1 %v679_v19, %s1539_s6 }
 0x382   : > { %1433 = vrot.lane.b32.xlu1 %v1412_v20, %s1540_s7 }
 0x3c4   : > { %v1414_v23 = vpop.permute.xlu0 %1413  ;;  %v1384_v24 = vpop.permute.xlu1 %1383 }
 0x3c5   : > { %v1415_v28 = vunpack.i.l.bf16 %v1414_v23  ;;  %v1385_v42 = vunpack.i.l.bf16 %v1384_v24  ;;  %v1416_v60 = vunpack.i.h.bf16 %v1414_v23  ;;  %v1386_v7 = vunpack.i.h.bf16 %v1384_v24 }
 0x3c7   : > { %v731_v6 = vsel %vm290_vm7, %v1415_v28, %v1416_v60  ;;  %v701_v14 = vsel %vm244_vm3, %v1385_v42, %v1386_v7 }
 0x3c8   : > { %v1788_v27 = vpop.permute.xlu0 %1418 }
 0x3c9   : > { %v1420_v31 = vunpack.i.l.bf16 %v1788_v27  ;;  %v1421_v3 = vunpack.i.h.bf16 %v1788_v27 }
 0x3cb   : > { %v1447_v32 = vpack.i.bf16 %v1420_v31, %v1415_v28 }
 0x3cc   : > { %v1389_v33 = vpop.permute.xlu1 %1388  ;;  %v1424_v34 = vpop.permute.xlu0 %1423 }
 0x3cd   : > { %v1390_v35 = vunpack.i.l.bf16 %v1389_v33  ;;  %1448 = vrot.lane.b32.xlu1 %v1447_v32, %s1540_s7  ;;  %v1391_v37 = vunpack.i.h.bf16 %v1389_v33  ;;  %v1425_v40 = vunpack.i.l.bf16 %v1424_v34  ;;  %v1426_v10 = vunpack.i.h.bf16 %v1424_v34 }
 0x3ce   : > { %v739_v32 = vsel %vm303_vm6, %v1420_v31, %v1421_v3  ;;  %v1547_v31 = vmov 3  }
 0x3cf   : > { %v1437_v36 = vpack.i.bf16 %v1390_v35, %v687_v21  ;;  %v700_v45 = vsel %vm244_vm3, %v1391_v37, %v1385_v42  ;;  %v702_v12 = vsel %vm244_vm3, %v1386_v7, %v1390_v35  ;;  %v747_v15 = vsel %vm316_vm4, %v1425_v40, %v1426_v10  ;;  %1512 = vset.pattern.permute.xlu1 %v1547_v31 }
 0x3d0   : > { %v1394_v38 = vpop.permute.xlu1 %1393  ;;  %v1794_v39 = vpop.permute.xlu0 %1428  ;;  %v1467_v49 = vpack.i.bf16 %v700_v45, %v1542_v26  ;;  %v1462_v17 = vpack.i.bf16 %v702_v12, %v701_v14 }
 0x3d1   : > { %1438 = vrot.lane.b32.xlu0 %v1437_v36, %s1540_s7  ;;  %v1430_v41 = vunpack.i.l.bf16 %v1794_v39  ;;  %v1396_v47 = vunpack.i.h.bf16 %v1394_v38  ;;  %v1395_v48 = vunpack.i.l.bf16 %v1394_v38  ;;  %v1431_v24 = vunpack.i.h.bf16 %v1794_v39 }
 0x3d3   : > { %v1457_v43 = vpack.i.bf16 %v1430_v41, %v1425_v40  ;;  %v712_v52 = vsel %vm260_vm0, %v1395_v48, %v1396_v47  ;;  %v755_v37 = vsel %vm329_vm5, %v1430_v41, %v1431_v24 }
 0x3d4   : > { %v1399_v44 = vpop.permute.xlu1 %1398  ;;  %v758_v28 = vpop.permute.xlu0 %757 }
 0x3d5   : > { %v1400_v46 = vunpack.i.l.bf16 %v1399_v44  ;;  %1458 = vrot.lane.b32.xlu1 %v1457_v43, %s1540_s7  ;;  %v1401_v53 = vunpack.i.h.bf16 %v1399_v44 }
 0x3d7   : > { %v713_v51 = vsel %vm260_vm0, %v1396_v47, %v1400_v46  ;;  %v711_v62 = vsel %vm260_vm0, %v1401_v53, %v1395_v48  ;;  %vm898_vm0 = vcmask 588800  }
 0x3d8   : > { %v1404_v50 = vpop.permute.xlu1 %1403  ;;  %v1472_v54 = vpack.i.bf16 %v713_v51, %v712_v52  ;;  %v762_v40 = vpop.permute.xlu0 %761 }
 0x3d9   : > { %1468 = vrot.lane.b32.xlu1 %v1467_v49, %s1540_s7  ;;  %v1405_v57 = vunpack.i.l.bf16 %v1404_v50  ;;  %v1406_v1 = vunpack.i.h.bf16 %v1404_v50 }
 0x3db   : > { %v723_v21 = vsel %vm276_vm1, %v1405_v57, %v1406_v1 }
 0x3dc   : > { %v1409_v56 = vpop.permute.xlu1 %1408 }
 0x3dd   : > { %v1411_v58 = vunpack.i.h.bf16 %v1409_v56  ;;  %v1410_v59 = vunpack.i.l.bf16 %v1409_v56  ;;  %1473 = vrot.lane.b32.xlu1 %v1472_v54, %s1540_s7 }
 0x3df   : > { %v1442_v61 = vpack.i.bf16 %v1410_v59, %v1400_v46  ;;  %v722_v63 = vsel %vm276_vm1, %v1411_v58, %v1405_v57  ;;  %v724_v19 = vsel %vm276_vm1, %v1406_v1, %v1410_v59 }
 0x3e0   : > { %v730_v2 = vpop.permute.xlu1 %729  ;;  %v1482_v4 = vpack.i.bf16 %v722_v63, %v711_v62  ;;  %v1477_v22 = vpack.i.bf16 %v724_v19, %v723_v21 }
 0x3e1   : > { %v732_v5 = vsel %vm290_vm7, %v1416_v60, %v730_v2  ;;  %1443 = vrot.lane.b32.xlu0 %v1442_v61, %s1540_s7 }
 0x3e2   : > { %1483 = vrot.lane.b32.xlu1 %v1482_v4, %s1540_s7  ;;  %v1487_v8 = vpack.i.bf16 %v732_v5, %v731_v6 }
 0x3e4   : > { %v738_v9 = vpop.permute.xlu1 %737 }
 0x3e5   : > { %v1452_v11 = vpack.i.bf16 %v738_v9, %v730_v2  ;;  %v740_v23 = vsel %vm303_vm6, %v1421_v3, %v738_v9 }
 0x3e6   : > { %1488 = vrot.lane.b32.xlu1 %v1487_v8, %s1540_s7  ;;  %v1492_v34 = vpack.i.bf16 %v740_v23, %v739_v32 }
 0x3e7   : > { %1453 = vrot.lane.b32.xlu0 %v1452_v11, %s1540_s7 }
 0x3e8   : > { %v746_v13 = vpop.permute.xlu1 %745 }
 0x3e9   : > { %v748_v16 = vsel %vm316_vm4, %v1426_v10, %v746_v13 }
 0x3ea   : > { %v1497_v18 = vpack.i.bf16 %v748_v16, %v747_v15 }
 0x3eb   : > { %1463 = vrot.lane.b32.xlu0 %v1462_v17, %s1540_s7 }
 0x3ec   : > { %v754_v20 = vpop.permute.xlu1 %753  ;;  %1498 = vrot.lane.b32.xlu1 %v1497_v18, %s1540_s7 }
 0x3ed   : > { %v756_v36 = vsel %vm329_vm5, %v1431_v24, %v754_v20  ;;  %v1507_v27 = vpack.i.bf16 %v754_v20, %v746_v13 }
 0x3ee   : > { %v1502_v38 = vpack.i.bf16 %v756_v36, %v755_v37 }
 0x3ef   : > { %1478 = vrot.lane.b32.xlu0 %v1477_v22, %s1540_s7 }
 0x3f0   : > { %v760_v33 = vpop.permute.xlu1 %759 }
 0x3f1   : > { %v763_v35 = vsel %vm342_vm8, %v758_v28, %v760_v33  ;;  %v764_v42 = vsel %vm342_vm8, %v760_v33, %v762_v40 }
 0x3f2   : > { %838 = vrot.lane.b32.xlu1 %v763_v35, %s1540_s7 }
 0x3f3   : > { %1493 = vrot.lane.b32.xlu0 %v1492_v34, %s1540_s7 }
 0x3f4   : > { %v1434_v39 = vpop.permute.xlu1 %1433 }
 0x3f5   : > { %v1436_v50 = vunpack.i.h.bf16 %v1434_v39  ;;  %v1435_v51 = vunpack.i.l.bf16 %v1434_v39 }
 0x3f6   : > { %836 = vrot.lane.b32.xlu1 %v758_v28, %s1540_s7 }
 0x3f7   : > { %1503 = vrot.lane.b32.xlu0 %v1502_v38, %s1540_s7  ;;  %v845_v5 = vsel %vm425_vm10, %v1435_v51, %v1436_v50 }
 0x3fa   : > { %769 = vperm.xlu1 %1512, %v1716_v29  }
 0x3fb   : > { %1508 = vrot.lane.b32.xlu0 %v1507_v27, %s1540_s7 }
 0x3ff   : > { %840 = vrot.lane.b32.xlu0 %v764_v42, %s1540_s7 }
 0x403   : > { %842 = vrot.lane.b32.xlu0 %v762_v40, %s1540_s7 }
 0x43f   : > { %v1844_v41 = vpop.permute.xlu1 %1448 }
 0x440   : > { %v1450_v32 = vunpack.i.l.bf16 %v1844_v41  ;;  %v1451_v37 = vunpack.i.h.bf16 %v1844_v41 }
 0x443   : > { %v1439_v45 = vpop.permute.xlu0 %1438 }
 0x444   : > { %v1440_v52 = vunpack.i.l.bf16 %v1439_v45  ;;  %v1441_v57 = vunpack.i.h.bf16 %v1439_v45 }
 0x446   : > { %v846_v63 = vsel %vm425_vm10, %v1436_v50, %v1440_v52 }
 0x447   : > { %v1846_v43 = vpop.permute.xlu1 %1458 }
 0x44b   : > { %v1469_v44 = vpop.permute.xlu1 %1468 }
 0x44c   : > { %v1470_v53 = vunpack.i.l.bf16 %v1469_v44  ;;  %v1471_v59 = vunpack.i.h.bf16 %v1469_v44 }
 0x44e   : > { %v844_v2 = vsel %vm425_vm10, %v1470_v53, %v1435_v51  ;;  %v1461_v53 = vunpack.i.h.bf16 %v1846_v43 }
 0x44f   : > { %v1474_v46 = vpop.permute.xlu1 %1473 }
 0x450   : > { %v1476_v54 = vunpack.i.h.bf16 %v1474_v46  ;;  %v1475_v56 = vunpack.i.l.bf16 %v1474_v46 }
 0x452   : > { %v851_v10 = vsel %vm425_vm10, %v1475_v56, %v1476_v54 }
 0x453   : > { %v1444_v47 = vpop.permute.xlu0 %1443 }
 0x454   : > { %v1484_v49 = vpop.permute.xlu1 %1483  ;;  %v1445_v60 = vunpack.i.l.bf16 %v1444_v47  ;;  %v1446_v11 = vunpack.i.h.bf16 %v1444_v47 }
 0x455   : > { %v1485_v4 = vunpack.i.l.bf16 %v1484_v49  ;;  %v1486_v16 = vunpack.i.h.bf16 %v1484_v49 }
 0x456   : > { %v852_v15 = vsel %vm425_vm10, %v1476_v54, %v1445_v60 }
 0x457   : > { %v850_v19 = vsel %vm425_vm10, %v1485_v4, %v1475_v56 }
 0x458   : > { %v1489_v6 = vpop.permute.xlu1 %1488 }
 0x459   : > { %v1454_v48 = vpop.permute.xlu0 %1453  ;;  %v1491_v20 = vunpack.i.h.bf16 %v1489_v6  ;;  %v1490_v21 = vunpack.i.l.bf16 %v1489_v6 }
 0x45a   : > { %v1455_v3 = vunpack.i.l.bf16 %v1454_v48  ;;  %v1456_v38 = vunpack.i.h.bf16 %v1454_v48  ;;  %v1460_v48 = vunpack.i.l.bf16 %v1846_v43 }
 0x45b   : > { %v856_v42 = vsel %vm425_vm10, %v1450_v32, %v1490_v21  ;;  %v857_v44 = vsel %vm425_vm10, %v1490_v21, %v1491_v20  ;;  %v1549_v32 = vmov 5  }
 0x45c   : > { %v858_v40 = vsel %vm425_vm10, %v1491_v20, %v1455_v3  ;;  %1514 = vset.pattern.permute.xlu1 %v1549_v32 }
 0x45d   : > { %v1464_v58 = vpop.permute.xlu0 %1463 }
 0x45e   : > { %v1466_v61 = vunpack.i.h.bf16 %v1464_v58  ;;  %v1465_v62 = vunpack.i.l.bf16 %v1464_v58  ;;  %v1499_v22 = vpop.permute.xlu1 %1498 }
 0x45f   : > { %v1500_v39 = vunpack.i.l.bf16 %v1499_v22  ;;  %v1501_v45 = vunpack.i.h.bf16 %v1499_v22 }
 0x460   : > { %v849_v7 = vsel %vm425_vm10, %v1466_v61, %v1441_v57  ;;  %v847_v8 = vsel %vm425_vm10, %v1471_v59, %v1465_v62  ;;  %v848_v9 = vsel %vm425_vm10, %v1465_v62, %v1466_v61 }
 0x461   : > { %v1250_v12 = vpack.c.bf16 %v849_v7, %v846_v63  ;;  %v1235_v1 = vpack.c.bf16 %v847_v8, %v844_v2  ;;  %v1479_v13 = vpop.permute.xlu0 %1478  ;;  %v1233_v14 = vpack.c.bf16 %v848_v9, %v845_v5  ;;  %v862_v58 = vsel %vm425_vm10, %v1460_v48, %v1500_v39 }
 0x462   : > { %v1481_v17 = vunpack.i.h.bf16 %v1479_v13  ;;  %v1480_v18 = vunpack.i.l.bf16 %v1479_v13  ;;  %v863_v60 = vsel %vm425_vm10, %v1500_v39, %v1501_v45 }
 0x463   : > { %1234 = vmatprep.subr.bf16.mxu0 %v1233_v14  ;;  %1251 = vmatpush3.bf16.msra.mxu1 %v1250_v12 }
 0x464   : > { %v855_v23 = vsel %vm425_vm10, %v1481_v17, %v1446_v11  ;;  %v853_v24 = vsel %vm425_vm10, %v1486_v16, %v1480_v18  ;;  %1236 = vmatpush1.bf16.msra.mxu0 %v1235_v1  ;;  %1252 = vmatprep.subr.bf16.mxu1 %v1541_v55  ;;  %v854_v28 = vsel %vm425_vm10, %v1480_v18, %v1481_v17  ;;  %v839_v54 = vpop.permute.xlu1 %838 }
 0x465   : > { %v1239_v33 = vpack.c.bf16 %v853_v24, %v850_v19  ;;  %v1253_v34 = vpack.c.bf16 %v855_v23, %v852_v15  ;;  %v1494_v35 = vpop.permute.xlu0 %1493  ;;  %v1237_v36 = vpack.c.bf16 %v854_v28, %v851_v10  ;;  %v1548_v28 = vmov 4  }
 0x466   : > { %v1496_v27 = vunpack.i.h.bf16 %v1494_v35  ;;  %v1495_v31 = vunpack.i.l.bf16 %v1494_v35  ;;  %1513 = vset.pattern.permute.xlu0 %v1548_v28 }
 0x467   : > { %1238 = vmatprep.subr.bf16.mxu0 %v1237_v36  ;;  %1254 = vmatpush3.bf16.msra.mxu1 %v1253_v34 }
 0x468   : > { %v861_v46 = vsel %vm425_vm10, %v1496_v27, %v1456_v38  ;;  %v859_v47 = vsel %vm425_vm10, %v1451_v37, %v1495_v31  ;;  %1240 = vmatpush1.bf16.msra.mxu0 %v1239_v33  ;;  %1255 = vmatprep.subr.bf16.mxu1 %v1541_v55  ;;  %v860_v41 = vsel %vm425_vm10, %v1495_v31, %v1496_v27  ;;  %v837_v5 = vpop.permute.xlu1 %836 }
 0x469   : > { %v1243_v49 = vpack.c.bf16 %v859_v47, %v856_v42  ;;  %v1256_v50 = vpack.c.bf16 %v861_v46, %v858_v40  ;;  %v1504_v51 = vpop.permute.xlu0 %1503  ;;  %v1241_v52 = vpack.c.bf16 %v860_v41, %v857_v44  ;;  %v868_v11 = vsel %vm425_vm10, %v837_v5, %v839_v54 }
 0x46a   : > { %v1506_v56 = vunpack.i.h.bf16 %v1504_v51  ;;  %v1505_v57 = vunpack.i.l.bf16 %v1504_v51 }
 0x46b   : > { %1242 = vmatprep.subr.bf16.mxu0 %v1241_v52  ;;  %1257 = vmatpush3.bf16.msra.mxu1 %v1256_v50 }
 0x46c   : > { %v865_v59 = vsel %vm425_vm10, %v1461_v53, %v1505_v57  ;;  %1244 = vmatpush1.bf16.msra.mxu0 %v1243_v49  ;;  %v866_v61 = vsel %vm425_vm10, %v1505_v57, %v1506_v56  ;;  %1258 = vmatprep.subr.bf16.mxu1 %v1541_v55  ;;  %v765_v55 = vld [vmem:[%s1906_s2] sm:$0xff] }
 0x46d   : > { %v1247_v62 = vpack.c.bf16 %v865_v59, %v862_v58  ;;  %v1509_v63 = vpop.permute.xlu0 %1508  ;;  %v1245_v2 = vpack.c.bf16 %v866_v61, %v863_v60 }
 0x46e   : > { %v1511_v43 = vunpack.i.h.bf16 %v1509_v63  ;;  %v1510_v4 = vunpack.i.l.bf16 %v1509_v63 }
 0x46f   : > { %1246 = vmatprep.subr.bf16.mxu0 %v1245_v2 }
 0x470   : > { %v864_v6 = vsel %vm425_vm10, %v1501_v45, %v1510_v4  ;;  %v867_v7 = vsel %vm425_vm10, %v1506_v56, %v1511_v43  ;;  %1248 = vmatpush1.bf16.msra.mxu0 %v1247_v62 }
 0x471   : > { %v1259_v8 = vpack.c.bf16 %v867_v7, %v864_v6  ;;  %v841_v9 = vpop.permute.xlu0 %840 }
 0x472   : > { %v869_v10 = vsel %vm425_vm10, %v839_v54, %v841_v9 }
 0x473   : > { %918 = vmatprep.subr.mxu0 %v869_v10  ;;  %1260 = vmatpush3.bf16.msra.mxu1 %v1259_v8 }
 0x474   : > { %919 = vmatpush1.msra.mxu0 %v868_v11  ;;  %1214 = vmatprep.subr.mxu1 %v1542_v26 }
 0x475   : > { %v843_v12 = vpop.permute.xlu0 %842  ;;  %1165 = vmatmul.mubr.msk.f32.vlgmr.msra.gmra.mrb[2].mxu0 %vm898_vm0, %v765_v55 }
 0x476   : > { %v870_v1 = vsel %vm425_vm10, %v841_v9, %v843_v12 }
 0x477   : > { %1215 = vmatpush3.msra.mxu1 %v870_v1 }
 0x478   : > { %1217 = vmatmul.mubr.msk.f32.vlgmr.msra.gmra.mrb[2].mxu1 %vm898_vm0, %v765_v55 }
 0x479   : > { %v770_v13 = vpop.permute.xlu1 %769 }
 0x548   : > { %v968_v14 = vpop.f32.mrb[2].mxu0 }
 0x549   : > { %v969_v15 = vadd.f32 %v968_v14, %v770_v13  ;;  %v970_v16 = vpop.f32.mrb[3].mxu0 }
 0x54a   : > { %v971_v17 = vadd.f32 %v970_v16, %v770_v13 }
 0x54b   : > { %v1039_v18 = vpop.f32.mrb[2].mxu1  ;;  %v1043_v19 = vmul.f32 %v969_v15, %v1751_v0 }
 0x54c   : > { %v1044_v3 = vmul.f32 %v971_v17, %v1753_v30  ;;  %v1040_v20 = vadd.f32 %v1039_v18, %v770_v13  ;;  %v1218_v21 = vpop.f32.mrb[3].mxu1 }
 0x54e   : > { %v1045_v26 = vmul.f32 %v1040_v20, %v1749_v25  ;;  %v1046_v22 = vadd.f32 %v1044_v3, %v1043_v19 }
 0x550   : > { %v1047_v23 = vsel %vm624_vm12, %v1045_v26, 0.0 }
 0x551   : > { %v1048_v24 = vadd.f32 %v1047_v23, %v1046_v22 }
 0x553   : > { %1049 = vadd.xlane.f32.xlu0 %v1048_v24 }
 0x569   : > { %1073 = vperm.xlu0 %1513, %v1716_v29  }
 0x56d   : > { %1515 = vset.pattern.permute.xlu0 %v1549_v32 }
 0x5e0   : > { %v1050_v33 = vpop.xlane.xlu0 %1049 }
 0x5e1   : > { %v1051_v34 = vmul.f32 0.00390625, %v1050_v33 }
 0x5e3   : > { %v1052_v35 = vsub.f32 %v969_v15, %v1051_v34  ;;  %v1053_v36 = vsub.f32 %v971_v17, %v1051_v34  ;;  %v1054_v37 = vsub.f32 %v1040_v20, %v1051_v34 }
 0x5e5   : > { %v1055_v38 = vmul.f32 %v1052_v35, %v1751_v0  ;;  %v1056_v27 = vmul.f32 %v1053_v36, %v1753_v30  ;;  %v1057_v31 = vmul.f32 %v1054_v37, %v1749_v25 }
 0x5e7   : > { %v1058_v40 = vmul.f32 %v1055_v38, %v1055_v38  ;;  %v1059_v42 = vmul.f32 %v1056_v27, %v1056_v27  ;;  %v1060_v39 = vmul.f32 %v1057_v31, %v1057_v31 }
 0x5e8   : > { %v1074_v49 = vpop.permute.xlu0 %1073 }
 0x5e9   : > { %v1061_v44 = vadd.f32 %v1059_v42, %v1058_v40  ;;  %v1062_v45 = vsel %vm624_vm12, %v1060_v39, 0.0 }
 0x5eb   : > { %v1063_v46 = vadd.f32 %v1062_v45, %v1061_v44 }
 0x5ed   : > { %1064 = vadd.xlane.f32.xlu1 %v1063_v46 }
 0x5fe   : > { %1080 = vperm.xlu1 %1514, %v1716_v29  }
 0x67a   : > { %v1065_v47 = vpop.xlane.xlu1 %1064 }
 0x67b   : > { %v1066_v41 = vmul.f32 0.00390625, %v1065_v47 }
 0x67d   : > { %v1067_v48 = vadd.f32 1e-05, %v1066_v41 }
 0x67e   : > { %v1081_v51 = vpop.permute.xlu1 %1080 }
 0x67f   : > { %1522 = vrsqrt.f32 %v1067_v48 }
 0x689   : > { %v1523_v0 = vpop.eup %1522 }
 0x68a   : > { %v1069_v30 = vmul.f32 %v1523_v0, %v1052_v35  ;;  %v1070_v50 = vmul.f32 %v1523_v0, %v1053_v36  ;;  %v1071_v25 = vmul.f32 %v1523_v0, %v1054_v37 }
 0x68c   : > { %v1076_v52 = vmul.f32 %v1074_v49, %v1069_v30  ;;  %v1077_v53 = vmul.f32 %v1074_v49, %v1070_v50  ;;  %v1078_v54 = vmul.f32 %v1074_v49, %v1071_v25 }
 0x68e   : > { %v1083_v56 = vadd.f32 %v1081_v51, %v1076_v52  ;;  %v1084_v57 = vadd.f32 %v1081_v51, %v1077_v53  ;;  %v1085_v58 = vadd.f32 %v1081_v51, %v1078_v54 }
 0x690   : > { %vm1086_vm1 = vcmp.ge.f32.partialorder %v1083_v56, 0.0  ;;  %vm1087_vm2 = vcmp.ge.f32.partialorder %v1084_v57, 0.0  ;;  %vm1088_vm3 = vcmp.ge.f32.partialorder %v1085_v58, 0.0  ;;  %v1089_v29 = vmul.f32 0.2, %v1083_v56 }
 0x691   : > { %v1090_v59 = vmul.f32 0.2, %v1084_v57  ;;  %v1091_v60 = vmul.f32 0.2, %v1085_v58 }
 0x692   : > { %v1092_v61 = vsel %vm1086_vm1, %v1083_v56, %v1089_v29 }
 0x693   : > { %v1093_v62 = vsel %vm1087_vm2, %v1084_v57, %v1090_v59  ;;  %v1094_v63 = vsel %vm1088_vm3, %v1085_v58, %v1091_v60  ;;  %1095 = vst [vmem:[%s224_s21] sm:$0xff] %v1092_v61 }
 0x694   : > { %1096 = vst [vmem:[%s224_s21 + $0x8] sm:$0xff] %v1093_v62  ;;  %1097 = vst.msk [vmem:[%s224_s21 + $0x10] sm:$0xff] %vm624_vm12, %v1094_v63 }
 0x695 PF: > { %s15_s18 = sadd.s32 1, %s1530_s18  }
 0x696   : > { %p12_p4 = scmp.ge.s32.totalorder %s15_s18, 4  }
 0x698   :  { %14 = sbr.rel (!%p12_p4) target bundleno = 1 (0x1), region = 70 }

</bundles_post_ra>
